<compile_context>
chip_gen: v7x
topology: tpu7x:2x2x1
jax: 0.10.0
libtpu: 0.0.40
codegen_flags: <defaults>
</compile_context>

<pallas_src>
import functools

import numpy as np
import jax
import jax.numpy as jnp
from jax import lax
from jax.experimental import pallas as pl
from jax.experimental.pallas import tpu as pltpu

_LANE = 128            # lane width of every block row
_SUB = 32              # rows per inner compute tile -> 4 vregs per f32 temporary
_DEF_BLOCK_ROWS = 1024  # 1024 x 128 f32 = 512 KiB per DMA block (x2 double-buffered)


def _round_up(x, m):
    return ((x + m - 1) // m) * m


def _tv_kernel(x_ref, o_ref, *, block_rows, sub_rows, valid_rows, ragged):
    step = pl.program_id(0)

    @pl.when(step == 0)
    def _init():
        o_ref[...] = jnp.zeros_like(o_ref)

    # The kernel sees the natural NCHW flattening, so within every row of 128
    # lanes the spatial taps of each (n, c) image sit at lanes
    # [4k, 4k+1, 4k+2, 4k+3] = [x00, x01, x10, x11].
    lane = lax.broadcasted_iota(jnp.int32, (1, _LANE), 1)
    use_dh = (lane % 2) == 0   # lanes whose (x - x[j+1]) is a real horizontal diff
    use_dv = (lane % 4) < 2    # lanes whose (x - x[j+2]) is a real vertical diff

    def body(c, acc):
        r0 = pl.multiple_of(c * sub_rows, sub_rows)
        x = x_ref[pl.ds(r0, sub_rows), :].astype(jnp.float32)
        if ragged:
            # Rows of the last grid block past the end of the input hold
            # unspecified data: zero them before any arithmetic touches them.
            row = (step * block_rows + r0
                   + lax.broadcasted_iota(jnp.int32, (sub_rows, 1), 0))
            x = jnp.where(row < valid_rows, x, 0.0)

        # In-register de-interleave: lane j sees its group neighbours at j+1 /
        # j+2 (positive shifts LANE-1 / LANE-2 == jnp.roll by -1 / -2; the
        # wrap-around only ever lands on lanes the masks below discard).
        nxt1 = pltpu.roll(x, _LANE - 1, axis=1)
        nxt2 = pltpu.roll(x, _LANE - 2, axis=1)
        dh = x - nxt1          # valid at taps 0 (dh0) and 2 (dh1)
        dv = x - nxt2          # valid at taps 0 (dv0) and 1 (dv1)
        dh2 = dh * dh
        dv2 = dv * dv
        # Broadcast each squared diff to all four taps of its (2, 2) group so
        # every lane holds one term of the PyTorch broadcast:
        #   [dv0^2+dh0^2, dv1^2+dh0^2, dv0^2+dh1^2, dv1^2+dh1^2]
        dh2f = jnp.where(use_dh, dh2, pltpu.roll(dh2, 1, axis=1))
        dv2f = jnp.where(use_dv, dv2, pltpu.roll(dv2, 2, axis=1))
        t = dv2f + dh2f
        p = t * jnp.sqrt(jnp.sqrt(t))   # t ** 1.25 for t >= 0, without exp/log

        # Fold sub_rows -> 8 sublane rows with pure VPU adds (no cross-lane work).
        s = p[0:8, :]
        for k in range(1, sub_rows // 8):
            s = s + p[k * 8:(k + 1) * 8, :]
        return acc + s

    acc = lax.fori_loop(0, block_rows // sub_rows, body,
                        jnp.zeros((8, _LANE), jnp.float32))
    o_ref[...] += acc


def total_variation_loss(x, *, block_rows=None):
    """x: (N, C, 2, 2) array -> scalar float32 (matches the torch .mean())."""
    n, c, h, w = x.shape
    if h != 2 or w != 2:
        raise ValueError(
            "TotalVariationLoss's own broadcast is only valid for H == W == 2")
    nc = n * c
    count = nc * h * w       # elements of the broadcast (2, 2) result
    v = count                # also the number of input elements

    x_flat = x.reshape(-1)   # free view of the natural NCHW layout

    if block_rows is None:
        block_rows = _DEF_BLOCK_ROWS
    block_rows = max(_SUB, _round_up(block_rows, _SUB))

    rows = pl.cdiv(v, _LANE)
    if rows <= block_rows:
        # Whole problem fits in one block: pad up to that (small) block so the
        # (rows, 128) view is exact and no in-kernel masking is needed.
        block_rows = max(_SUB, _round_up(rows, _SUB))
        padded = block_rows * _LANE
        if padded != v:
            x_flat = jnp.pad(x_flat, (0, padded - v))
        rows = block_rows
        ragged = False
    else:
        # Large input: zero-copy whenever N*C % 32 == 0 (v % 128 == 0); only an
        # awkward N*C needs a small pad copy to make the (rows, 128) view
        # possible.  The ragged last *block* is masked in-kernel, not padded.
        padded = rows * _LANE
        if padded != v:
            x_flat = jnp.pad(x_flat, (0, padded - v))
        ragged = (rows % block_rows) != 0

    x2 = x_flat.reshape(rows, _LANE)
    steps = pl.cdiv(rows, block_rows)

    kernel = functools.partial(_tv_kernel, block_rows=block_rows,
                               sub_rows=_SUB, valid_rows=rows, ragged=ragged)

    cost = pl.CostEstimate(
        flops=14 * int(x2.size),
        transcendentals=2 * int(x2.size),
        bytes_accessed=int(x2.size) * x2.dtype.itemsize + 8 * _LANE * 4,
    )

    # NOTE: on v7x, sharding the row blocks across the 2 TensorCores
    # (CORE_PARALLEL / core_map) could give up to ~2x once compute-bound; left
    # out here because it cannot be verified in this environment and is
    # neutral-to-negative on single-TC v5e/v6e.
    partials = pl.pallas_call(
        kernel,
        out_shape=jax.ShapeDtypeStruct((8, _LANE), jnp.float32),
        grid_spec=pltpu.PrefetchScalarGridSpec(
            num_scalar_prefetch=0,
            grid=(steps,),
            in_specs=[pl.BlockSpec((block_rows, _LANE), lambda i: (i, 0))],
            out_specs=pl.BlockSpec((8, _LANE), lambda i: (0, 0)),
        ),
        compiler_params=pltpu.CompilerParams(
            dimension_semantics=("arbitrary",),
        ),
        cost_estimate=cost,
    )(x2)

    # Final 1024-element reduction + mean scaling in the wrapper (cheap and
    # keeps the kernel's resident accumulator race-free).
    return jnp.sum(partials) / jnp.float32(count)


def _reference(x):
    # pure-JAX re-statement of the PyTorch forward
    dv = x[:, :, :-1, :] - x[:, :, 1:, :]
    dh = x[:, :, :, :-1] - x[:, :, :, 1:]
    return jnp.mean((dv ** 2 + dh ** 2) ** 1.25)


if __name__ == "__main__":
    key = jax.random.PRNGKey(0)
    k1, k2, k3 = jax.random.split(key, 3)

    # Tiny input (batch=2, channels=4, spatial 2x2 — H=W=2 is required for the
    # module's own broadcasting to be valid): single padded block, one step.
    x_small = jax.random.normal(k1, (2, 4, 2, 2), dtype=jnp.float32)
    out_small = jax.block_until_ready(total_variation_loss(x_small))
    np.testing.assert_allclose(np.asarray(out_small),
                               np.asarray(_reference(x_small)),
                               rtol=1e-4, atol=1e-6)

    # N*C % 32 == 0: zero-copy layout path; small block_rows forces the
    # multi-step grid, resident accumulator and ragged-tail row mask.
    x_mid = jax.random.normal(k2, (8, 160, 2, 2), dtype=jnp.float32)
    out_mid = jax.block_until_ready(total_variation_loss(x_mid, block_rows=32))
    np.testing.assert_allclose(np.asarray(out_mid),
                               np.asarray(_reference(x_mid)),
                               rtol=1e-4, atol=1e-6)

    # Awkward N*C (not a multiple of 32): sub-row pad path + multi-step + mask.
    x_odd = jax.random.normal(k3, (3, 350, 2, 2), dtype=jnp.float32)
    out_odd = jax.block_until_ready(total_variation_loss(x_odd, block_rows=32))
    np.testing.assert_allclose(np.asarray(out_odd),
                               np.asarray(_reference(x_odd)),
                               rtol=1e-4, atol=1e-6)

    print("KERNEL_OK")
</pallas_src>

<mosaic_0001>
module attributes {stable_mosaic.version = 11 : i64} {
  func.func @_tv_kernel(%arg0: i32, %arg1: memref<32x128xf32, #tpu.memory_space<vmem>>, %arg2: memref<8x128xf32, #tpu.memory_space<vmem>>) attributes {dimension_semantics = [#tpu.dimension_semantics<arbitrary>], iteration_bounds = array<i64: 1>, scalar_prefetch = 0 : i64, scratch_operands = 0 : i64, tpu.core_type = #tpu.core_type<tc>, window_params = [{transform_indices = @transform_0, window_bounds = array<i64: 32, 128>}, {pipeline_mode = #tpu.pipeline_mode<synchronous>, transform_indices = @transform_1, window_bounds = array<i64: 8, 128>}]} {
    %c0_i32 = arith.constant 0 : i32
    %0 = arith.cmpi eq, %arg0, %c0_i32 : i32
    %1 = arith.extui %0 : i1 to i32
    %c0_i32_0 = arith.constant 0 : i32
    %2 = arith.cmpi ne, %1, %c0_i32_0 : i32
    scf.if %2 {
      %cst_20 = arith.constant 0.000000e+00 : f32
      %74 = vector.broadcast %cst_20 : f32 to vector<8x128xf32>
      %c0_21 = arith.constant 0 : index
      %c0_22 = arith.constant 0 : index
      %75 = vector.load %arg2[%c0_21, %c0_22] : memref<8x128xf32, #tpu.memory_space<vmem>>, vector<8x128xf32>
      tpu.vector_store %arg2[%c0_21, %c0_22], %74 {strides = array<i32>} : memref<8x128xf32, #tpu.memory_space<vmem>>, vector<8x128xf32>,
    } else {
    }
    %3 = tpu.iota {dimensions = array<i32: 1>} : vector<1x128xi32>
    %c2_i32 = arith.constant 2 : i32
    %c0_i32_1 = arith.constant 0 : i32
    %4 = arith.cmpi eq, %c2_i32, %c0_i32_1 : i32
    %c1_i32 = arith.constant 1 : i32
    %5 = arith.select %4, %c1_i32, %c2_i32 : i32
    %6 = vector.broadcast %5 : i32 to vector<1x128xi32>
    %7 = arith.remsi %3, %6 : vector<1x128xi32>
    %c0_i32_2 = arith.constant 0 : i32
    %8 = vector.broadcast %c0_i32_2 : i32 to vector<1x128xi32>
    %9 = arith.cmpi ne, %7, %8 : vector<1x128xi32>
    %c0_i32_3 = arith.constant 0 : i32
    %10 = vector.broadcast %c0_i32_3 : i32 to vector<1x128xi32>
    %11 = arith.cmpi slt, %7, %10 : vector<1x128xi32>
    %c0_i32_4 = arith.constant 0 : i32
    %12 = arith.cmpi slt, %5, %c0_i32_4 : i32
    %13 = vector.broadcast %12 : i1 to vector<1x128xi1>
    %14 = vector.broadcast %13 : vector<1x128xi1> to vector<1x128xi1>
    %15 = arith.xori %11, %14 : vector<1x128xi1>
    %16 = arith.andi %15, %9 : vector<1x128xi1>
    %17 = vector.broadcast %5 : i32 to vector<1x128xi32>
    %18 = arith.addi %7, %17 : vector<1x128xi32>
    %19 = arith.select %16, %18, %7 : vector<1x128xi1>, vector<1x128xi32>
    %c0_i32_5 = arith.constant 0 : i32
    %20 = vector.broadcast %c0_i32_5 : i32 to vector<1x128xi32>
    %21 = arith.cmpi eq, %19, %20 : vector<1x128xi32>
    %c4_i32 = arith.constant 4 : i32
    %c0_i32_6 = arith.constant 0 : i32
    %22 = arith.cmpi eq, %c4_i32, %c0_i32_6 : i32
    %c1_i32_7 = arith.constant 1 : i32
    %23 = arith.select %22, %c1_i32_7, %c4_i32 : i32
    %24 = vector.broadcast %23 : i32 to vector<1x128xi32>
    %25 = arith.remsi %3, %24 : vector<1x128xi32>
    %c0_i32_8 = arith.constant 0 : i32
    %26 = vector.broadcast %c0_i32_8 : i32 to vector<1x128xi32>
    %27 = arith.cmpi ne, %25, %26 : vector<1x128xi32>
    %c0_i32_9 = arith.constant 0 : i32
    %28 = vector.broadcast %c0_i32_9 : i32 to vector<1x128xi32>
    %29 = arith.cmpi slt, %25, %28 : vector<1x128xi32>
    %c0_i32_10 = arith.constant 0 : i32
    %30 = arith.cmpi slt, %23, %c0_i32_10 : i32
    %31 = vector.broadcast %30 : i1 to vector<1x128xi1>
    %32 = vector.broadcast %31 : vector<1x128xi1> to vector<1x128xi1>
    %33 = arith.xori %29, %32 : vector<1x128xi1>
    %34 = arith.andi %33, %27 : vector<1x128xi1>
    %35 = vector.broadcast %23 : i32 to vector<1x128xi32>
    %36 = arith.addi %25, %35 : vector<1x128xi32>
    %37 = arith.select %34, %36, %25 : vector<1x128xi1>, vector<1x128xi32>
    %c2_i32_11 = arith.constant 2 : i32
    %38 = vector.broadcast %c2_i32_11 : i32 to vector<1x128xi32>
    %39 = arith.cmpi slt, %37, %38 : vector<1x128xi32>
    %cst = arith.constant 0.000000e+00 : f32
    %40 = vector.broadcast %cst : f32 to vector<8x128xf32>
    %c0_i32_12 = arith.constant 0 : i32
    %c32_i32 = arith.constant 32 : i32
    %41 = arith.muli %c0_i32_12, %c32_i32 : i32
    %42 = tpu.assume_multiple %41, 32 : i32
    %43 = arith.index_cast %42 : i32 to index
    %c0 = arith.constant 0 : index
    %44 = vector.load %arg1[%43, %c0] : memref<32x128xf32, #tpu.memory_space<vmem>>, vector<32x128xf32>
    %c127_i32 = arith.constant 127 : i32
    %45 = tpu.dynamic_rotate %44 by %c127_i32 dim 1 : vector<32x128xf32>, i32 -> vector<32x128xf32>
    %c126_i32 = arith.constant 126 : i32
    %46 = tpu.dynamic_rotate %44 by %c126_i32 dim 1 : vector<32x128xf32>, i32 -> vector<32x128xf32>
    %47 = arith.subf %44, %45 : vector<32x128xf32>
    %48 = arith.subf %44, %46 : vector<32x128xf32>
    %49 = arith.mulf %47, %47 : vector<32x128xf32>
    %50 = arith.mulf %48, %48 : vector<32x128xf32>
    %c1_i32_13 = arith.constant 1 : i32
    %51 = tpu.dynamic_rotate %49 by %c1_i32_13 dim 1 : vector<32x128xf32>, i32 -> vector<32x128xf32>
    %52 = vector.shape_cast %21 : vector<1x128xi1> to vector<1x128xi1>
    %53 = vector.broadcast %52 : vector<1x128xi1> to vector<32x128xi1>
    %54 = arith.select %53, %49, %51 : vector<32x128xi1>, vector<32x128xf32>
    %c2_i32_14 = arith.constant 2 : i32
    %55 = tpu.dynamic_rotate %50 by %c2_i32_14 dim 1 : vector<32x128xf32>, i32 -> vector<32x128xf32>
    %56 = vector.shape_cast %39 : vector<1x128xi1> to vector<1x128xi1>
    %57 = vector.broadcast %56 : vector<1x128xi1> to vector<32x128xi1>
    %58 = arith.select %57, %50, %55 : vector<32x128xi1>, vector<32x128xf32>
    %59 = arith.addf %58, %54 : vector<32x128xf32>
    %60 = math.sqrt %59 : vector<32x128xf32>
    %61 = math.sqrt %60 : vector<32x128xf32>
    %62 = arith.mulf %59, %61 : vector<32x128xf32>
    %63 = vector.extract_strided_slice %62 {offsets = [0, 0], sizes = [8, 128], strides = [1, 1]} : vector<32x128xf32> to vector<8x128xf32>
    %64 = vector.extract_strided_slice %62 {offsets = [8, 0], sizes = [8, 128], strides = [1, 1]} : vector<32x128xf32> to vector<8x128xf32>
    %65 = arith.addf %63, %64 : vector<8x128xf32>
    %66 = vector.extract_strided_slice %62 {offsets = [16, 0], sizes = [8, 128], strides = [1, 1]} : vector<32x128xf32> to vector<8x128xf32>
    %67 = arith.addf %65, %66 : vector<8x128xf32>
    %68 = vector.extract_strided_slice %62 {offsets = [24, 0], sizes = [8, 128], strides = [1, 1]} : vector<32x128xf32> to vector<8x128xf32>
    %69 = arith.addf %67, %68 : vector<8x128xf32>
    %70 = arith.addf %40, %69 : vector<8x128xf32>
    %c1_i32_15 = arith.constant 1 : i32
    %c0_16 = arith.constant 0 : index
    %c0_17 = arith.constant 0 : index
    %71 = vector.load %arg2[%c0_16, %c0_17] : memref<8x128xf32, #tpu.memory_space<vmem>>, vector<8x128xf32>
    %72 = arith.addf %71, %70 : vector<8x128xf32>
    %c0_18 = arith.constant 0 : index
    %c0_19 = arith.constant 0 : index
    %73 = vector.load %arg2[%c0_18, %c0_19] : memref<8x128xf32, #tpu.memory_space<vmem>>, vector<8x128xf32>
    tpu.vector_store %arg2[%c0_18, %c0_19], %72 {strides = array<i32>} : memref<8x128xf32, #tpu.memory_space<vmem>>, vector<8x128xf32>,
    return
  }
  func.func @transform_0(%arg0: i32) -> (i32, i32) {
    %c0_i32 = arith.constant 0 : i32
    %c0_i32_0 = arith.constant 0 : i32
    return %arg0, %c0_i32 : i32, i32
  }
  func.func @transform_1(%arg0: i32) -> (i32, i32) {
    %c0_i32 = arith.constant 0 : i32
    %c0_i32_0 = arith.constant 0 : i32
    %c0_i32_1 = arith.constant 0 : i32
    return %c0_i32, %c0_i32_0 : i32, i32
  }
}

</mosaic_0001>

<bundles_post_ra>
// kernel: tpu_custom_call.1
= control target key start
LH: loop header
LB: loop body
LE: loop exit
PB: predicated region body
PF: predicated region fallthrough
CT: control target
= control target key end

     0   :  { %6 = vsyncpa [#allocation3], 0  ;;  %s381_s0 = inlined_call_operand.hbm [shape: f32[32,128], index: 0, kind: input, shape index: {}]   ;;  %s382_s1 = inlined_call_operand.hbm [shape: f32[8,128], index: 1, kind: output, shape index: {}]  }
   0x1   :  { %7 = vsyncpa [#allocation4], 0  ;;  %s279_s6 = smov [#allocation2]   ;;  %s231_s10 = scalar_lea.hbm %s381_s0, 512 }
   0x2   :  { %s13_s7 = sshll.u32 %s279_s6, 4  ;;  %p232_p0 = scmp.ne.s32.totalorder %s381_s0, %s231_s10  ;;  %s14_s7 = int_to_ptr.vmem [resolvable:$true] %s13_s7 }
   0x3   :  { %p235_p1 = scmp.lt.u32.totalorder %s231_s10, %s381_s0 }
   0x5   :  { %p237_p2 = pnand %p235_p1, %p232_p0 }
   0x7   :  { %240 = shalt.err (!%p237_p2)
}
   0x8   :  { %s241_s15 = scalar_lea.vmem %s14_s7, 512  ;;  %p246_p4 = scmp.lt.s32.totalorder %s14_s7, %s14_s7 }
   0x9   :  { %p242_p3 = scmp.ne.s32.totalorder %s14_s7, %s241_s15  ;;  %p247_p5 = scmp.lt.s32.totalorder %s241_s15, %s241_s15 }
   0xb   :  { %p248_p6 = por %p247_p5, %p246_p4 }
   0xd   :  { %p249_p7 = pnand %p248_p6, %p242_p3 }
   0xf   :  { %252 = shalt.err (!%p249_p7)
}
  0x10   :  { %s280_s16 = smov 128   ;;  %s281_s17 = smov 8  }
  0x11   :  { %19 = dma.hbm_to_vmem [thread:$0]  %s381_s0, 512, %s14_s7, [#allocation3], %s280_s16, %s280_s16, %s281_s17  }
  0x12   :  { %275 = dma.done.wait [#allocation3], 512  }
  0x13   :  { %276 = vsyncadd [#allocation3], 4294966784  ;;  %v56_v0 = vld [vmem:[#allocation2] sm:$0xff]  ;;  %s282_s20 = smov 127   ;;  %s283_s21 = smov 126   ;;  %v57_v1 = vld [vmem:[#allocation2 + $0x8] sm:$0xff]  ;;  %v28_v28 = vlaneseq }
  0x14   :  { %60 = vrot.lane.b32.xlu0 %v56_v0, %s282_s20  ;;  %68 = vrot.lane.b32.xlu1 %v56_v0, %s283_s21  ;;  %v58_v2 = vld [vmem:[#allocation2 + $0x10] sm:$0xff]  ;;  %v59_v3 = vld [vmem:[#allocation2 + $0x18] sm:$0xff]  ;;  %s284_s0 = smov 1   ;;  %s285_s22 = smov 2  }
  0x15   :  { %v29_v29 = vand.u32 127, %v28_v28  ;;  %s286_s23 = smov [#allocation5]  }
  0x16   :  { %s197_s24 = sshll.u32 %s286_s23, 4  ;;  %s198_s24 = int_to_ptr.vmem [resolvable:$true] %s197_s24 }
  0x17   :  { %v34_v30 = vand.u32 1, %v29_v29  ;;  %v47_v31 = vand.u32 3, %v29_v29  ;;  %s253_s25 = scalar_lea.vmem %s198_s24, 128  ;;  %p258_p9 = scmp.lt.s32.totalorder %s198_s24, %s198_s24 }
  0x18   :  { %62 = vrot.lane.b32.xlu0 %v57_v1, %s282_s20  ;;  %70 = vrot.lane.b32.xlu1 %v57_v1, %s283_s21  ;;  %p254_p8 = scmp.ne.s32.totalorder %s198_s24, %s253_s25  ;;  %p259_p10 = scmp.lt.s32.totalorder %s253_s25, %s253_s25 }
  0x19   :  { %vm309_vm0 = vcmp.eq.s32.totalorder %v34_v30, 0  ;;  %vm313_vm1 = vcmp.lt.s32.totalorder %v47_v31, 2 }
  0x1a   :  { %p260_p11 = por %p259_p10, %p258_p9 }
  0x1c   :  { %64 = vrot.lane.b32.xlu0 %v58_v2, %s282_s20  ;;  %72 = vrot.lane.b32.xlu1 %v58_v2, %s283_s21  ;;  %p261_p12 = pnand %p260_p11, %p254_p8 }
  0x20   :  { %66 = vrot.lane.b32.xlu0 %v59_v3, %s282_s20  ;;  %74 = vrot.lane.b32.xlu1 %v59_v3, %s283_s21 }
  0x86   :  { %v61_v4 = vpop.permute.xlu0 %60  ;;  %v69_v5 = vpop.permute.xlu1 %68 }
  0x87   :  { %v76_v6 = vsub.f32 %v56_v0, %v61_v4  ;;  %v80_v7 = vsub.f32 %v56_v0, %v69_v5 }
  0x89   :  { %v84_v8 = vmul.f32 %v76_v6, %v76_v6  ;;  %v88_v11 = vmul.f32 %v80_v7, %v80_v7 }
  0x8a   :  { %v63_v9 = vpop.permute.xlu0 %62  ;;  %v71_v10 = vpop.permute.xlu1 %70 }
  0x8b   :  { %v77_v12 = vsub.f32 %v57_v1, %v63_v9  ;;  %92 = vrot.lane.b32.xlu0 %v84_v8, %s284_s0  ;;  %v81_v13 = vsub.f32 %v57_v1, %v71_v10 }
  0x8d   :  { %v85_v14 = vmul.f32 %v77_v12, %v77_v12  ;;  %v89_v17 = vmul.f32 %v81_v13, %v81_v13 }
  0x8e   :  { %v65_v15 = vpop.permute.xlu0 %64  ;;  %v73_v16 = vpop.permute.xlu1 %72 }
  0x8f   :  { %v78_v18 = vsub.f32 %v58_v2, %v65_v15  ;;  %106 = vrot.lane.b32.xlu0 %v88_v11, %s285_s22  ;;  %94 = vrot.lane.b32.xlu1 %v85_v14, %s284_s0  ;;  %v82_v19 = vsub.f32 %v58_v2, %v73_v16 }
  0x91   :  { %v86_v20 = vmul.f32 %v78_v18, %v78_v18  ;;  %v90_v23 = vmul.f32 %v82_v19, %v82_v19 }
  0x92   :  { %v67_v21 = vpop.permute.xlu0 %66  ;;  %v75_v22 = vpop.permute.xlu1 %74 }
  0x93   :  { %v79_v24 = vsub.f32 %v59_v3, %v67_v21  ;;  %108 = vrot.lane.b32.xlu1 %v89_v17, %s285_s22  ;;  %96 = vrot.lane.b32.xlu0 %v86_v20, %s284_s0  ;;  %v83_v25 = vsub.f32 %v59_v3, %v75_v22 }
  0x95   :  { %v87_v26 = vmul.f32 %v79_v24, %v79_v24  ;;  %v91_v27 = vmul.f32 %v83_v25, %v83_v25 }
  0x97   :  { %110 = vrot.lane.b32.xlu1 %v90_v23, %s285_s22  ;;  %98 = vrot.lane.b32.xlu0 %v87_v26, %s284_s0 }
  0x9b   :  { %112 = vrot.lane.b32.xlu1 %v91_v27, %s285_s22 }
  0xfd   :  { %v93_v32 = vpop.permute.xlu0 %92 }
  0xfe   :  { %v102_v37 = vsel %vm309_vm0, %v84_v8, %v93_v32 }
 0x101   :  { %v95_v35 = vpop.permute.xlu1 %94  ;;  %v107_v36 = vpop.permute.xlu0 %106 }
 0x102   :  { %v116_v38 = vsel %vm313_vm1, %v88_v11, %v107_v36  ;;  %v103_v42 = vsel %vm309_vm0, %v85_v14, %v95_v35 }
 0x103   :  { %v321_v39 = vadd.f32 %v116_v38, %v102_v37 }
 0x105   :  { %215 = vrsqrt.f32 %v321_v39  ;;  %v109_v40 = vpop.permute.xlu1 %108  ;;  %v97_v41 = vpop.permute.xlu0 %96  ;;  %vm126_vm2 = vcmp.eq.f32.partialorder %v321_v39, inf  ;;  %v129_v56 = vand.u32 2147483648, %v321_v39  ;;  %vm128_vm3 = vcmp.eq.f32.partialorder %v321_v39, 0.0 }
 0x106   :  { %v117_v43 = vsel %vm313_vm1, %v89_v17, %v109_v40  ;;  %v104_v46 = vsel %vm309_vm0, %v86_v20, %v97_v41 }
 0x107   :  { %v328_v44 = vadd.f32 %v117_v43, %v103_v42 }
 0x109   :  { %217 = vrsqrt.f32 %v328_v44  ;;  %v111_v45 = vpop.permute.xlu1 %110  ;;  %v99_v49 = vpop.permute.xlu0 %98  ;;  %vm133_vm4 = vcmp.eq.f32.partialorder %v328_v44, inf  ;;  %v136_v61 = vand.u32 2147483648, %v328_v44  ;;  %vm135_vm5 = vcmp.eq.f32.partialorder %v328_v44, 0.0 }
 0x10a   :  { %v118_v47 = vsel %vm313_vm1, %v90_v23, %v111_v45  ;;  %v105_v51 = vsel %vm309_vm0, %v87_v26, %v99_v49 }
 0x10b   :  { %v335_v48 = vadd.f32 %v118_v47, %v104_v46 }
 0x10d   :  { %219 = vrsqrt.f32 %v335_v48  ;;  %v113_v50 = vpop.permute.xlu1 %112  ;;  %vm140_vm6 = vcmp.eq.f32.partialorder %v335_v48, inf  ;;  %v143_v2 = vand.u32 2147483648, %v335_v48  ;;  %vm142_vm7 = vcmp.eq.f32.partialorder %v335_v48, 0.0 }
 0x10e   :  { %v119_v52 = vsel %vm313_vm1, %v91_v27, %v113_v50 }
 0x10f   :  { %v216_v53 = vpop.eup %215  ;;  %v342_v54 = vadd.f32 %v119_v52, %v105_v51 }
 0x110   :  { %v125_v55 = vmul.f32 %v216_v53, %v321_v39 }
 0x111   :  { %221 = vrsqrt.f32 %v342_v54  ;;  %vm147_vm8 = vcmp.eq.f32.partialorder %v342_v54, inf  ;;  %v150_v7 = vand.u32 2147483648, %v342_v54  ;;  %vm149_vm9 = vcmp.eq.f32.partialorder %v342_v54, 0.0 }
 0x112   :  { %v127_v57 = vsel %vm126_vm2, %v321_v39, %v125_v55 }
 0x113   :  { %v218_v58 = vpop.eup %217  ;;  %v130_v59 = vsel %vm128_vm3, %v129_v56, %v127_v57 }
 0x114   :  { %v132_v60 = vmul.f32 %v218_v58, %v328_v44  ;;  %223 = vrsqrt.f32 %v130_v59  ;;  %vm154_vm10 = vcmp.eq.f32.partialorder %v130_v59, inf  ;;  %v157_v18 = vand.u32 2147483648, %v130_v59 }
 0x115   :  { %vm156_vm13 = vcmp.eq.f32.partialorder %v130_v59, 0.0 }
 0x116   :  { %v134_v62 = vsel %vm133_vm4, %v328_v44, %v132_v60 }
 0x117   :  { %v220_v63 = vpop.eup %219  ;;  %v137_v0 = vsel %vm135_vm5, %v136_v61, %v134_v62 }
 0x118   :  { %v139_v1 = vmul.f32 %v220_v63, %v335_v48  ;;  %225 = vrsqrt.f32 %v137_v0  ;;  %vm161_vm11 = vcmp.eq.f32.partialorder %v137_v0, inf  ;;  %v164_v14 = vand.u32 2147483648, %v137_v0 }
 0x119   :  { %vm163_vm12 = vcmp.eq.f32.partialorder %v137_v0, 0.0 }
 0x11a   :  { %v141_v3 = vsel %vm140_vm6, %v335_v48, %v139_v1 }
 0x11b   :  { %v222_v4 = vpop.eup %221  ;;  %v144_v5 = vsel %vm142_vm7, %v143_v2, %v141_v3 }
 0x11c   :  { %v146_v6 = vmul.f32 %v222_v4, %v342_v54  ;;  %227 = vrsqrt.f32 %v144_v5  ;;  %vm168_vm14 = vcmp.eq.f32.partialorder %v144_v5, inf  ;;  %v171_v22 = vand.u32 2147483648, %v144_v5 }
 0x11d   :  { %vm170_vm15 = vcmp.eq.f32.partialorder %v144_v5, 0.0 }
 0x11e   :  { %v224_v8 = vpop.eup %223  ;;  %v148_v9 = vsel %vm147_vm8, %v342_v54, %v146_v6 }
 0x11f   :  { %v151_v10 = vsel %vm149_vm9, %v150_v7, %v148_v9  ;;  %v153_v11 = vmul.f32 %v224_v8, %v130_v59 }
 0x120   :  { %229 = vrsqrt.f32 %v151_v10  ;;  %vm175_vm0 = vcmp.eq.f32.partialorder %v151_v10, inf  ;;  %v178_v30 = vand.u32 2147483648, %v151_v10  ;;  %vm177_vm1 = vcmp.eq.f32.partialorder %v151_v10, 0.0 }
 0x121   :  { %v155_v15 = vsel %vm154_vm10, %v130_v59, %v153_v11 }
 0x122   :  { %v226_v12 = vpop.eup %225  ;;  %v158_v21 = vsel %vm156_vm13, %v157_v18, %v155_v15 }
 0x123   :  { %v160_v13 = vmul.f32 %v226_v12, %v137_v0  ;;  %v180_v28 = vmul.f32 %v158_v21, %v321_v39 }
 0x125   :  { %v162_v16 = vsel %vm161_vm11, %v137_v0, %v160_v13 }
 0x126   :  { %v228_v17 = vpop.eup %227  ;;  %v165_v19 = vsel %vm163_vm12, %v164_v14, %v162_v16 }
 0x127   :  { %v167_v20 = vmul.f32 %v228_v17, %v144_v5  ;;  %v181_v24 = vmul.f32 %v165_v19, %v328_v44 }
 0x129   :  { %v169_v23 = vsel %vm168_vm14, %v144_v5, %v167_v20  ;;  %v184_v32 = vadd.f32 %v181_v24, %v180_v28 }
 0x12a   :  { %v230_v25 = vpop.eup %229  ;;  %v172_v26 = vsel %vm170_vm15, %v171_v22, %v169_v23 }
 0x12b   :  { %v174_v27 = vmul.f32 %v230_v25, %v151_v10  ;;  %v182_v29 = vmul.f32 %v172_v26, %v335_v48 }
 0x12d   :  { %v176_v31 = vsel %vm175_vm0, %v151_v10, %v174_v27  ;;  %v185_v35 = vadd.f32 %v184_v32, %v182_v29 }
 0x12e   :  { %v179_v33 = vsel %vm177_vm1, %v178_v30, %v176_v31 }
 0x12f   :  { %v183_v34 = vmul.f32 %v179_v33, %v342_v54 }
 0x131   :  { %v186_v36 = vadd.f32 %v185_v35, %v183_v34 }
 0x133   :  { %190 = vst [vmem:[#allocation5] sm:$0xff] %v186_v36 }
 0x134   :  { %264 = shalt.err (!%p261_p12)
}
 0x135   :  { %s265_s28 = scalar_lea.hbm %s382_s1, 128 }
 0x136   :  { %p266_p13 = scmp.ne.s32.totalorder %s382_s1, %s265_s28  ;;  %p269_p0 = scmp.lt.u32.totalorder %s265_s28, %s382_s1 }
 0x138   :  { %p271_p1 = pnand %p269_p0, %p266_p13 }
 0x13a   :  { %274 = shalt.err (!%p271_p1)
}
 0x13b   :  { %200 = dma.vmem_to_hbm [thread:$0]  %s198_s24, 128, %s382_s1, [#allocation4]  }
 0x13c   :  { %277 = dma.done.wait [#allocation4], 128  }
 0x13d   :  { %278 = vsyncadd [#allocation4], 4294967168 }
 0x13e   :  { %204 = vsyncpa [#allocation3], 1 }
 0x13f   :  { %205 = vsyncpa [#allocation4], 1 }

</bundles_post_ra>
